<compile_context>
chip_gen: v7x
topology: tpu7x:2x2x1
jax: 0.10.0
libtpu: 0.0.40
codegen_flags: <defaults>
</compile_context>

<pallas_src>
import functools

import jax
import jax.numpy as jnp
from jax.experimental import pallas as pl
from jax.experimental.pallas import tpu as pltpu


def _round_up(x, m):
    return ((x + m - 1) // m) * m


def _variance_loss_kernel(x_ref, o_ref, sum_ref, sumsq_ref, *,
                          n, block_n, gamma, eps, mask_rows):
    # x_ref:     (tN, tD) tile of latents (any float dtype) in VMEM
    # o_ref:     (1, tD) per-feature hinge values for this feature block
    # sum_ref:   (1, tD) f32 running per-feature sum        (VMEM scratch)
    # sumsq_ref: (1, tD) f32 running per-feature sum of sq. (VMEM scratch)
    k = pl.program_id(1)

    @pl.when(k == 0)
    def _():
        sum_ref[...] = jnp.zeros_like(sum_ref)
        sumsq_ref[...] = jnp.zeros_like(sumsq_ref)

    x = x_ref[...].astype(jnp.float32)  # widen per-tile only
    if mask_rows:
        # Boundary batch block: rows past the true batch size hold undefined data.
        # Select (not multiply) so inf/NaN garbage cannot leak into the sums.
        row = jax.lax.broadcasted_iota(jnp.int32, x.shape, 0) + k * block_n
        x = jnp.where(row < n, x, jnp.float32(0.0))

    sum_ref[...] += jnp.sum(x, axis=0, keepdims=True)          # (1, tD)
    sumsq_ref[...] += jnp.sum(x * x, axis=0, keepdims=True)    # (1, tD)

    @pl.when(k == pl.num_programs(1) - 1)
    def _():
        s = sum_ref[...]
        ss = sumsq_ref[...]
        # Unbiased variance (torch.var default: correction = 1).
        var = (ss - s * s * jnp.float32(1.0 / n)) * jnp.float32(1.0 / (n - 1))
        var = jnp.maximum(var, 0.0)   # guard tiny negatives from f32 cancellation
        std = jnp.sqrt(var + jnp.float32(eps))
        o_ref[...] = jnp.maximum(jnp.float32(gamma) - std, 0.0)


def variance_loss(latents, gamma=1.0, eps=1e-6, *, block_n=1024, block_d=1024):
    """latents: (N, D) float array. Returns scalar float32 loss."""
    n, d = latents.shape
    assert n > 1, "unbiased variance requires at least 2 samples (divides by n-1)"

    # Lane-dense feature tiles (multiple of 128), sublane-aligned batch tiles (mult. of 8).
    tD = min(block_d, _round_up(d, 128))
    tN = min(block_n, _round_up(n, 8))
    grid = (pl.cdiv(d, tD), pl.cdiv(n, tN))  # feature blocks (parallel), batch blocks last
    mask_rows = (n % tN) != 0                # static decision: emit row mask only if needed

    # NOTE: gamma/eps/n are baked in statically; distinct values recompile. Move to SMEM
    # scalars if they need to vary per call without recompilation.
    hinge = pl.pallas_call(
        functools.partial(_variance_loss_kernel, n=n, block_n=tN,
                          gamma=gamma, eps=eps, mask_rows=mask_rows),
        out_shape=jax.ShapeDtypeStruct((1, d), jnp.float32),
        grid_spec=pltpu.PrefetchScalarGridSpec(
            num_scalar_prefetch=0,
            grid=grid,
            in_specs=[pl.BlockSpec((tN, tD), lambda j, k: (k, j))],
            out_specs=pl.BlockSpec((1, tD), lambda j, k: (0, j)),
            scratch_shapes=[
                pltpu.VMEM((1, tD), jnp.float32),   # per-feature sum
                pltpu.VMEM((1, tD), jnp.float32),   # per-feature sum of squares
            ],
        ),
        compiler_params=pltpu.CompilerParams(
            dimension_semantics=("parallel", "arbitrary"),
        ),
        cost_estimate=pl.CostEstimate(
            flops=3 * n * d,
            transcendentals=d,
            bytes_accessed=n * d * latents.dtype.itemsize + d * 4,
        ),
    )(latents)

    # Final mean over the true feature count (tiny, leave to XLA).
    return jnp.mean(hinge)


def _variance_loss_ref(latents, gamma=1.0, eps=1e-6):
    x = latents.astype(jnp.float32)
    var = jnp.var(x, axis=0, ddof=1)          # unbiased, matches torch default
    s = jnp.sqrt(var + eps)
    return jnp.mean(jnp.maximum(gamma - s, 0.0))


if __name__ == "__main__":
    key = jax.random.PRNGKey(0)

    # 1) Module-consistent small shape: batch=8 samples, 32-dim latents.
    latents = jax.random.normal(key, (8, 32), dtype=jnp.float32) * 0.5
    loss = jax.block_until_ready(variance_loss(latents, gamma=1.0, eps=1e-6))
    ref = _variance_loss_ref(latents, gamma=1.0, eps=1e-6)
    assert jnp.allclose(loss, ref, rtol=1e-4, atol=1e-5), (loss, ref)

    # 2) Exercise multi-block grid + boundary blocks + in-kernel row masking
    #    (3x3 grid of 8x128 tiles over a 21x300 array, no wrapper-side padding).
    key2 = jax.random.PRNGKey(1)
    latents2 = jax.random.normal(key2, (21, 300), dtype=jnp.float32) * 2.0 + 0.3
    loss2 = jax.block_until_ready(
        variance_loss(latents2, gamma=1.0, eps=1e-6, block_n=8, block_d=128)
    )
    ref2 = _variance_loss_ref(latents2, gamma=1.0, eps=1e-6)
    assert jnp.allclose(loss2, ref2, rtol=1e-4, atol=1e-5), (loss2, ref2)

    print("KERNEL_OK")
</pallas_src>

<mosaic_0001>
module attributes {stable_mosaic.version = 11 : i64} {
  func.func @_variance_loss_kernel(%arg0: i32, %arg1: i32, %arg2: memref<8x128xf32, #tpu.memory_space<vmem>>, %arg3: memref<1x128xf32, #tpu.memory_space<vmem>>, %arg4: memref<1x128xf32, #tpu.memory_space<vmem>>, %arg5: memref<1x128xf32, #tpu.memory_space<vmem>>) attributes {dimension_semantics = [#tpu.dimension_semantics<parallel>, #tpu.dimension_semantics<arbitrary>], iteration_bounds = array<i64: 1, 1>, scalar_prefetch = 0 : i64, scratch_operands = 2 : i64, tpu.core_type = #tpu.core_type<tc>, window_params = [{transform_indices = @transform_0, window_bounds = array<i64: 8, 128>}, {transform_indices = @transform_1, window_bounds = array<i64: 1, 128>}]} {
    %c0_i32 = arith.constant 0 : i32
    %0 = arith.cmpi eq, %arg1, %c0_i32 : i32
    %1 = arith.extui %0 : i1 to i32
    %c0_i32_0 = arith.constant 0 : i32
    %2 = arith.cmpi ne, %1, %c0_i32_0 : i32
    scf.if %2 {
      %cst_13 = arith.constant 0.000000e+00 : f32
      %18 = vector.broadcast %cst_13 : f32 to vector<1x128xf32>
      %c0_14 = arith.constant 0 : index
      %c0_15 = arith.constant 0 : index
      %19 = vector.load %arg4[%c0_14, %c0_15] : memref<1x128xf32, #tpu.memory_space<vmem>>, vector<1x128xf32>
      tpu.vector_store %arg4[%c0_14, %c0_15], %18 {strides = array<i32>} : memref<1x128xf32, #tpu.memory_space<vmem>>, vector<1x128xf32>,
      %cst_16 = arith.constant 0.000000e+00 : f32
      %20 = vector.broadcast %cst_16 : f32 to vector<1x128xf32>
      %c0_17 = arith.constant 0 : index
      %c0_18 = arith.constant 0 : index
      %21 = vector.load %arg5[%c0_17, %c0_18] : memref<1x128xf32, #tpu.memory_space<vmem>>, vector<1x128xf32>
      tpu.vector_store %arg5[%c0_17, %c0_18], %20 {strides = array<i32>} : memref<1x128xf32, #tpu.memory_space<vmem>>, vector<1x128xf32>,
    } else {
    }
    %c0 = arith.constant 0 : index
    %c0_1 = arith.constant 0 : index
    %3 = vector.load %arg2[%c0, %c0_1] : memref<8x128xf32, #tpu.memory_space<vmem>>, vector<8x128xf32>
    %c0_2 = arith.constant 0 : index
    %c0_3 = arith.constant 0 : index
    %4 = vector.load %arg4[%c0_2, %c0_3] : memref<1x128xf32, #tpu.memory_space<vmem>>, vector<1x128xf32>
    %cst = arith.constant dense<0.000000e+00> : vector<128xf32>
    %5 = vector.multi_reduction <add>, %3, %cst [0] : vector<8x128xf32> to vector<128xf32>
    %6 = vector.shape_cast %5 : vector<128xf32> to vector<1x128xf32>
    %7 = arith.addf %4, %6 : vector<1x128xf32>
    %c0_4 = arith.constant 0 : index
    %c0_5 = arith.constant 0 : index
    %8 = vector.load %arg4[%c0_4, %c0_5] : memref<1x128xf32, #tpu.memory_space<vmem>>, vector<1x128xf32>
    tpu.vector_store %arg4[%c0_4, %c0_5], %7 {strides = array<i32>} : memref<1x128xf32, #tpu.memory_space<vmem>>, vector<1x128xf32>,
    %c0_6 = arith.constant 0 : index
    %c0_7 = arith.constant 0 : index
    %9 = vector.load %arg5[%c0_6, %c0_7] : memref<1x128xf32, #tpu.memory_space<vmem>>, vector<1x128xf32>
    %10 = arith.mulf %3, %3 : vector<8x128xf32>
    %cst_8 = arith.constant dense<0.000000e+00> : vector<128xf32>
    %11 = vector.multi_reduction <add>, %10, %cst_8 [0] : vector<8x128xf32> to vector<128xf32>
    %12 = vector.shape_cast %11 : vector<128xf32> to vector<1x128xf32>
    %13 = arith.addf %9, %12 : vector<1x128xf32>
    %c0_9 = arith.constant 0 : index
    %c0_10 = arith.constant 0 : index
    %14 = vector.load %arg5[%c0_9, %c0_10] : memref<1x128xf32, #tpu.memory_space<vmem>>, vector<1x128xf32>
    tpu.vector_store %arg5[%c0_9, %c0_10], %13 {strides = array<i32>} : memref<1x128xf32, #tpu.memory_space<vmem>>, vector<1x128xf32>,
    %c0_i32_11 = arith.constant 0 : i32
    %15 = arith.cmpi eq, %arg1, %c0_i32_11 : i32
    %16 = arith.extui %15 : i1 to i32
    %c0_i32_12 = arith.constant 0 : i32
    %17 = arith.cmpi ne, %16, %c0_i32_12 : i32
    scf.if %17 {
      %c0_13 = arith.constant 0 : index
      %c0_14 = arith.constant 0 : index
      %18 = vector.load %arg4[%c0_13, %c0_14] : memref<1x128xf32, #tpu.memory_space<vmem>>, vector<1x128xf32>
      %c0_15 = arith.constant 0 : index
      %c0_16 = arith.constant 0 : index
      %19 = vector.load %arg5[%c0_15, %c0_16] : memref<1x128xf32, #tpu.memory_space<vmem>>, vector<1x128xf32>
      %20 = arith.mulf %18, %18 : vector<1x128xf32>
      %cst_17 = arith.constant 1.250000e-01 : f32
      %21 = vector.broadcast %cst_17 : f32 to vector<1x128xf32>
      %22 = arith.mulf %20, %21 : vector<1x128xf32>
      %23 = arith.subf %19, %22 : vector<1x128xf32>
      %cst_18 = arith.constant 0.142857149 : f32
      %24 = vector.broadcast %cst_18 : f32 to vector<1x128xf32>
      %25 = arith.mulf %23, %24 : vector<1x128xf32>
      %cst_19 = arith.constant 0.000000e+00 : f32
      %26 = vector.broadcast %cst_19 : f32 to vector<1x128xf32>
      %27 = arith.maximumf %25, %26 : vector<1x128xf32>
      %cst_20 = arith.constant 9.99999997E-7 : f32
      %28 = vector.broadcast %cst_20 : f32 to vector<1x128xf32>
      %29 = arith.addf %27, %28 : vector<1x128xf32>
      %30 = math.sqrt %29 : vector<1x128xf32>
      %cst_21 = arith.constant 1.000000e+00 : f32
      %31 = vector.broadcast %cst_21 : f32 to vector<1x128xf32>
      %32 = arith.subf %31, %30 : vector<1x128xf32>
      %cst_22 = arith.constant 0.000000e+00 : f32
      %33 = vector.broadcast %cst_22 : f32 to vector<1x128xf32>
      %34 = arith.maximumf %32, %33 : vector<1x128xf32>
      %c0_23 = arith.constant 0 : index
      %c0_24 = arith.constant 0 : index
      %35 = vector.load %arg3[%c0_23, %c0_24] : memref<1x128xf32, #tpu.memory_space<vmem>>, vector<1x128xf32>
      tpu.vector_store %arg3[%c0_23, %c0_24], %34 {strides = array<i32>} : memref<1x128xf32, #tpu.memory_space<vmem>>, vector<1x128xf32>,
    } else {
    }
    return
  }
  func.func @transform_0(%arg0: i32, %arg1: i32) -> (i32, i32) {
    %c0_i32 = arith.constant 0 : i32
    return %arg1, %arg0 : i32, i32
  }
  func.func @transform_1(%arg0: i32, %arg1: i32) -> (i32, i32) {
    %c0_i32 = arith.constant 0 : i32
    %c0_i32_0 = arith.constant 0 : i32
    return %c0_i32, %arg0 : i32, i32
  }
}

</mosaic_0001>

<bundles_post_ra>
// kernel: tpu_custom_call.1
= control target key start
LH: loop header
LB: loop body
LE: loop exit
PB: predicated region body
PF: predicated region fallthrough
CT: control target
= control target key end

     0   :  { %6 = vsyncpa [#allocation5], 0  ;;  %s173_s0 = inlined_call_operand.hbm [shape: f32[8,32], index: 0, kind: input, shape index: {}]   ;;  %s174_s1 = inlined_call_operand.hbm [shape: f32[1,32], index: 1, kind: output, shape index: {}]  }
   0x1   :  { %7 = vsyncpa [#allocation6], 0  ;;  %s136_s6 = smov [#allocation4]   ;;  %s88_s10 = scalar_lea.hbm %s173_s0, 128 }
   0x2   :  { %s14_s7 = sshll.u32 %s136_s6, 4  ;;  %p89_p0 = scmp.ne.s32.totalorder %s173_s0, %s88_s10  ;;  %s15_s7 = int_to_ptr.vmem [resolvable:$true] %s14_s7 }
   0x3   :  { %p92_p1 = scmp.lt.u32.totalorder %s88_s10, %s173_s0 }
   0x5   :  { %p94_p2 = pnand %p92_p1, %p89_p0 }
   0x7   :  { %97 = shalt.err (!%p94_p2)
}
   0x8   :  { %s98_s15 = scalar_lea.vmem %s15_s7, 128  ;;  %p103_p4 = scmp.lt.s32.totalorder %s15_s7, %s15_s7 }
   0x9   :  { %p99_p3 = scmp.ne.s32.totalorder %s15_s7, %s98_s15  ;;  %p104_p5 = scmp.lt.s32.totalorder %s98_s15, %s98_s15 }
   0xb   :  { %p105_p6 = por %p104_p5, %p103_p4 }
   0xd   :  { %p106_p7 = pnand %p105_p6, %p99_p3 }
   0xf   :  { %109 = shalt.err (!%p106_p7)
}
  0x10   :  { %17 = dma.hbm_to_vmem [thread:$0]  %s173_s0, 128, %s15_s7, [#allocation5]  }
  0x11   :  { %132 = dma.done.wait [#allocation5], 128  }
  0x12   :  { %133 = vsyncadd [#allocation5], 4294967168  ;;  %v137_v0 = vmov 0.0   ;;  %v27_v1 = vld [vmem:[#allocation4] sm:$0xff]  ;;  %s138_s0 = smov [#allocation7]  }
  0x13   :  { %25 = vst [vmem:[#allocation2] sm:$0x1] %v137_v0  ;;  %26 = vst [vmem:[#allocation3] sm:$0x1] %v137_v0  ;;  %v29_v2 = vrot.slane %v27_v1, 4  ;;  %v38_v3 = vmul.f32 %v27_v1, %v27_v1  ;;  %s74_s18 = sshll.u32 %s138_s0, 4  ;;  %s75_s18 = int_to_ptr.vmem [resolvable:$true] %s74_s18 }
  0x14   :  { %s110_s19 = scalar_lea.vmem %s75_s18, 16  ;;  %s114_s20 = scalar_lea.vmem %s75_s18, 32 }
  0x15   :  { %v30_v4 = vadd.f32 %v29_v2, %v27_v1  ;;  %v39_v5 = vrot.slane %v38_v3, 4  ;;  %p111_p8 = scmp.ne.s32.totalorder %s75_s18, %s110_s19  ;;  %p115_p9 = scmp.lt.s32.totalorder %s75_s18, %s75_s18 }
  0x16   :  { %p116_p10 = scmp.lt.s32.totalorder %s114_s20, %s110_s19 }
  0x17   :  { %v31_v6 = vrot.slane %v30_v4, 2  ;;  %v40_v7 = vadd.f32 %v39_v5, %v38_v3 }
  0x18   :  { %p117_p11 = por %p116_p10, %p115_p9 }
  0x19   :  { %v32_v8 = vadd.f32 %v31_v6, %v30_v4  ;;  %v41_v9 = vrot.slane %v40_v7, 2 }
  0x1a   :  { %v28_v12 = vld [vmem:[#allocation2] sm:$0x1]  ;;  %v37_v15 = vld [vmem:[#allocation3] sm:$0x1]  ;;  %p118_p12 = pnand %p117_p11, %p111_p8 }
  0x1b   :  { %v33_v10 = vrot.slane %v32_v8, 1  ;;  %v42_v11 = vadd.f32 %v41_v9, %v40_v7 }
  0x1d   :  { %v34_v13 = vadd.f32 %v33_v10, %v32_v8  ;;  %v43_v14 = vrot.slane %v42_v11, 1 }
  0x1f   :  { %v35_v16 = vadd.f32 %v34_v13, %v28_v12  ;;  %v44_v17 = vadd.f32 %v43_v14, %v42_v11 }
  0x21   :  { %36 = vst [vmem:[#allocation2] sm:$0x1] %v35_v16  ;;  %v45_v18 = vadd.f32 %v44_v17, %v37_v15 }
  0x23   :  { %46 = vst [vmem:[#allocation3] sm:$0x1] %v45_v18 }
  0x28   :  { %v50_v19 = vld [vmem:[#allocation2] sm:$0x1] }
  0x29   :  { %v52_v20 = vmul.f32 %v50_v19, %v50_v19 }
  0x2a   :  { %v51_v21 = vld [vmem:[#allocation3] sm:$0x1] }
  0x2b   :  { %v53_v22 = vmul.f32 0.125, %v52_v20 }
  0x2d   :  { %v54_v23 = vsub.f32 %v51_v21, %v53_v22 }
  0x2f   :  { %v55_v24 = vmul.f32 0.14285715, %v54_v23 }
  0x31   :  { %v56_v25 = vmax.f32 %v55_v24, 0.0 }
  0x33   :  { %v57_v26 = vadd.f32 1e-06, %v56_v25 }
  0x35   :  { %86 = vrsqrt.f32 %v57_v26  ;;  %vm60_vm0 = vcmp.eq.f32.partialorder %v57_v26, inf  ;;  %v63_v29 = vand.u32 2147483648, %v57_v26  ;;  %vm62_vm1 = vcmp.eq.f32.partialorder %v57_v26, 0.0 }
  0x3f   :  { %v87_v27 = vpop.eup %86 }
  0x40   :  { %v59_v28 = vmul.f32 %v87_v27, %v57_v26 }
  0x42   :  { %v61_v30 = vsel %vm60_vm0, %v57_v26, %v59_v28 }
  0x43   :  { %v64_v31 = vsel %vm62_vm1, %v63_v29, %v61_v30 }
  0x44   :  { %v65_v32 = vsub.f32 1.0, %v64_v31 }
  0x46   :  { %v66_v33 = vmax.f32 %v65_v32, 0.0 }
  0x48   :  { %67 = vst [vmem:[#allocation7] sm:$0x1] %v66_v33 }
  0x49   :  { %121 = shalt.err (!%p118_p12)
}
  0x4a   :  { %s122_s23 = scalar_lea.hbm %s174_s1, 16 }
  0x4b   :  { %p123_p13 = scmp.ne.s32.totalorder %s174_s1, %s122_s23  ;;  %p126_p0 = scmp.lt.u32.totalorder %s122_s23, %s174_s1 }
  0x4d   :  { %p128_p1 = pnand %p126_p0, %p123_p13 }
  0x4f   :  { %131 = shalt.err (!%p128_p1)
}
  0x50   :  { %77 = dma.vmem_to_hbm [thread:$0]  %s75_s18, 16, %s174_s1, [#allocation6]  }
  0x51   :  { %134 = dma.done.wait [#allocation6], 16  }
  0x52   :  { %135 = vsyncadd [#allocation6], 4294967280 }
  0x53   :  { %81 = vsyncpa [#allocation5], 1 }
  0x54   :  { %82 = vsyncpa [#allocation6], 1 }

</bundles_post_ra>
